<compile_context>
chip_gen: v7x
topology: tpu7x:2x2x1
jax: 0.10.0
libtpu: 0.0.40
codegen_flags: <defaults>
</compile_context>

<pallas_src>
import jax
import jax.numpy as jnp
from jax import lax
from jax.experimental import pallas as pl
from jax.experimental.pallas import tpu as pltpu


# ----------------------------------------------------------------------------
# Kernels
# ----------------------------------------------------------------------------
def _onehot_flat_kernel(ratings_ref, sel_ref, vidx_ref, o_ref):
    """Small-V path.

    ratings_ref: (TB, TS)      int32 in {1..5}
    sel_ref:     (TS, TS*V)    bf16, sel[t, l] = (l // V == t)   (resident)
    vidx_ref:    (1,  TS*V)    f32,  vidx[0, l] = l % V          (resident)
    o_ref:       (TB, TS*V)    f32 lane-dense flat one-hot
    """
    # Replicate each token's rating across its V-wide lane slot with a tiny
    # bf16 MXU matmul (exact: 0/1 selector, single nonzero term per output).
    r_rep = jnp.dot(ratings_ref[...].astype(jnp.bfloat16), sel_ref[...],
                    preferred_element_type=jnp.float32)          # (TB, TS*V)
    o_ref[...] = (r_rep == vidx_ref[...]).astype(jnp.float32)


def _onehot_dense_kernel(ratings_ref, o_ref):
    """Lane-friendly path (V >= 128): direct broadcast-compare, no matmul.

    ratings_ref: (TB, TS) int32;  o_ref: (TB, TS, TV) f32.
    """
    tb, ts, tv = o_ref.shape
    v0 = pl.program_id(2) * tv
    vids = lax.broadcasted_iota(jnp.int32, (tb, ts, tv), 2) + v0
    o_ref[...] = (vids == ratings_ref[...][:, :, None]).astype(jnp.float32)


# ----------------------------------------------------------------------------
# Tiling helpers
# ----------------------------------------------------------------------------
def _vmem_limit_bytes():
    """Generation-aware scoped-VMEM request (~half of physical, capped)."""
    cap = 64 * 1024 * 1024
    try:
        cap = int(pltpu.get_tpu_info().vmem_capacity_bytes)
    except Exception:
        pass
    return max(16 * 1024 * 1024, min(cap // 2, 64 * 1024 * 1024))


def _pick_tile(full, align, cap):
    """Pick tile t and padded extent.

    Returns (t, padded) with: t == full (if full <= cap), else t % align == 0
    and t <= ~cap; padded is the smallest multiple of t >= full (== full when
    an aligned divisor exists, so no padding is needed).
    """
    full, align, cap = int(full), int(align), int(cap)
    if full <= cap:
        return full, full
    t = (cap // align) * align
    while t >= align:                      # prefer an aligned divisor: no pad
        if full % t == 0:
            return t, full
        t -= align
    t = max(align, (cap // align) * align)
    padded = -(-full // t) * t
    return t, padded


# ----------------------------------------------------------------------------
# Wrapper paths
# ----------------------------------------------------------------------------
def _flat_path(ratings, B, S, V, budget, vmem_limit):
    """V < 128: lane-dense flat (TB, TS*V) output; sel / v_idx hoisted."""
    elem = 4
    # Seq tile: bounded by the resident sel plane (TS^2 * V * 2 bytes).
    sel_cap = max(1 << 20, budget // 6)
    ts_from_sel = int((sel_cap / (2.0 * V)) ** 0.5)
    ts_cap = max(128, (ts_from_sel // 128) * 128)
    TS, Sp = _pick_tile(S, 128, ts_cap)
    sel_bytes = TS * TS * V * 2
    # Output block: 4-8 MiB target; budget 2x out buffers + r_rep temp + sel.
    block_cap = min(8 << 20,
                    max(TS * V * elem * min(B, 8), (budget - sel_bytes) // 3))
    tb_cap = max(min(B, 8), block_cap // (TS * V * elem))
    TB, Bp = _pick_tile(B, 8, tb_cap)

    if (Bp, Sp) != (B, S):
        ratings = jnp.pad(ratings, ((0, Bp - B), (0, Sp - S)),
                          constant_values=1)

    # Per-tile constants, built once in the wrapper, kept VMEM-resident.
    lane = jnp.arange(TS * V, dtype=jnp.int32)
    sel = (lane[None, :] // V ==
           jnp.arange(TS, dtype=jnp.int32)[:, None]).astype(jnp.bfloat16)
    vidx = (lane % V).astype(jnp.float32)[None, :]            # (1, TS*V)

    grid = (Bp // TB, Sp // TS)
    out_flat = pl.pallas_call(
        _onehot_flat_kernel,
        out_shape=jax.ShapeDtypeStruct((Bp, Sp * V), jnp.float32),
        grid=grid,
        in_specs=[
            pl.BlockSpec((TB, TS), lambda i, j: (i, j)),
            pl.BlockSpec((TS, TS * V), lambda i, j: (0, 0)),   # resident
            pl.BlockSpec((1, TS * V), lambda i, j: (0, 0)),    # resident
        ],
        out_specs=pl.BlockSpec((TB, TS * V), lambda i, j: (i, j)),
        compiler_params=pltpu.CompilerParams(
            dimension_semantics=("parallel", "parallel"),
            vmem_limit_bytes=vmem_limit,
        ),
    )(ratings, sel, vidx)

    out = out_flat.reshape(Bp, Sp, V)       # free row-major metadata reshape
    if (Bp, Sp) != (B, S):
        out = out[:B, :S]
    return out


def _dense_path(ratings, B, S, V, budget, vmem_limit):
    """V >= 128: 3-D (TB, TS, TV) blocks, broadcast-compare one-hot."""
    elem = 4
    block_cap = min(8 << 20, budget // 4)   # 2x out buffers + iota/cmp temps
    TS, Sp = _pick_tile(S, 128, 128)        # keep seq tile modest
    tv_cap = max(128, block_cap // (min(B, 8) * TS * elem))
    TV, Vp = _pick_tile(V, 128, tv_cap)
    tb_cap = max(min(B, 8), block_cap // (TS * TV * elem))
    TB, Bp = _pick_tile(B, 8, tb_cap)

    if (Bp, Sp) != (B, S):
        ratings = jnp.pad(ratings, ((0, Bp - B), (0, Sp - S)),
                          constant_values=1)

    grid = (Bp // TB, Sp // TS, Vp // TV)
    out = pl.pallas_call(
        _onehot_dense_kernel,
        out_shape=jax.ShapeDtypeStruct((Bp, Sp, Vp), jnp.float32),
        grid=grid,
        in_specs=[pl.BlockSpec((TB, TS), lambda i, j, k: (i, j))],
        out_specs=pl.BlockSpec((TB, TS, TV), lambda i, j, k: (i, j, k)),
        compiler_params=pltpu.CompilerParams(
            dimension_semantics=("parallel", "parallel", "parallel"),
            vmem_limit_bytes=vmem_limit,
        ),
    )(ratings)

    if (Bp, Sp, Vp) != (B, S, V):
        out = out[:B, :S, :V]
    return out


def random_rating_generator(x, vocab_size, key):
    """Forward pass of RandomRatingGenerator. Returns (one_hot, None)."""
    B, S = x.shape                      # x values are unused, only the shape
    V = int(vocab_size)
    assert V >= 6, "vocab must contain rating positions 1..5"

    # One uniform rating per token in {1..5}  (== torch.randint(1, 6, ...)).
    ratings = jax.random.randint(key, (B, S), 1, 6, dtype=jnp.int32)

    vmem_limit = _vmem_limit_bytes()
    budget = int(vmem_limit * 0.7)      # headroom for compiler scratch

    if V >= 128:
        out = _dense_path(ratings, B, S, V, budget, vmem_limit)
    else:
        out = _flat_path(ratings, B, S, V, budget, vmem_limit)
    return out, None


# ----------------------------------------------------------------------------
# Demo / self-check
# ----------------------------------------------------------------------------
def _check(out, aux, B, S, V, key):
    assert out.shape == (B, S, V)
    assert out.dtype == jnp.float32
    assert aux is None
    assert bool(jnp.all(out.sum(axis=-1) == 1.0))
    assert bool(jnp.all((out == 0.0) | (out == 1.0)))
    hot = jnp.argmax(out, axis=-1)
    assert bool(jnp.all((hot >= 1) & (hot <= 5)))
    ratings_ref = jax.random.randint(key, (B, S), 1, 6, dtype=jnp.int32)
    assert bool(jnp.all(hot == ratings_ref))


if __name__ == "__main__":
    key = jax.random.PRNGKey(0)
    k_x, k_r1, k_r2 = jax.random.split(key, 3)

    batch, seq = 2, 8
    x = jax.random.randint(k_x, (batch, seq), 0, 32, dtype=jnp.int32)

    # Small-V path (flat lane-dense layout + resident bf16 selector).
    vocab_small = 32
    out1, aux1 = random_rating_generator(x, vocab_small, k_r1)
    out1 = jax.block_until_ready(out1)
    _check(out1, aux1, batch, seq, vocab_small, k_r1)

    # Lane-friendly path (3-D broadcast-compare).
    vocab_big = 128
    out2, aux2 = random_rating_generator(x, vocab_big, k_r2)
    out2 = jax.block_until_ready(out2)
    _check(out2, aux2, batch, seq, vocab_big, k_r2)

    print("KERNEL_OK")
</pallas_src>

<mosaic_0001>
module attributes {stable_mosaic.version = 11 : i64} {
  func.func @_onehot_flat_kernel(%arg0: i32, %arg1: i32, %arg2: memref<2x8xi32, #tpu.memory_space<vmem>>, %arg3: memref<8x256xbf16, #tpu.memory_space<vmem>>, %arg4: memref<1x256xf32, #tpu.memory_space<vmem>>, %arg5: memref<2x256xf32, #tpu.memory_space<vmem>>) attributes {dimension_semantics = [#tpu.dimension_semantics<parallel>, #tpu.dimension_semantics<parallel>], iteration_bounds = array<i64: 1, 1>, scalar_prefetch = 0 : i64, scratch_operands = 0 : i64, tpu.core_type = #tpu.core_type<tc>, window_params = [{transform_indices = @transform_0, window_bounds = array<i64: 2, 8>}, {pipeline_mode = #tpu.pipeline_mode<synchronous>, transform_indices = @transform_1, window_bounds = array<i64: 8, 256>}, {pipeline_mode = #tpu.pipeline_mode<synchronous>, transform_indices = @transform_2, window_bounds = array<i64: 1, 256>}, {transform_indices = @transform_3, window_bounds = array<i64: 2, 256>}]} {
    %c0 = arith.constant 0 : index
    %c0_0 = arith.constant 0 : index
    %0 = vector.load %arg2[%c0, %c0_0] : memref<2x8xi32, #tpu.memory_space<vmem>>, vector<2x8xi32>
    %1 = arith.sitofp %0 : vector<2x8xi32> to vector<2x8xbf16>
    %c0_1 = arith.constant 0 : index
    %c0_2 = arith.constant 0 : index
    %2 = vector.load %arg3[%c0_1, %c0_2] : memref<8x256xbf16, #tpu.memory_space<vmem>>, vector<8x256xbf16>
    %cst = arith.constant dense<0.000000e+00> : vector<2x256xf32>
    %3 = tpu.matmul %1, %2, %cst {dimension_numbers = #tpu.dot_dimension_numbers<[1], [0], [0], [1], [0, 0, 1, 1], [], []>} : vector<2x8xbf16>, vector<8x256xbf16>, vector<2x256xf32> -> vector<2x256xf32>
    %c0_3 = arith.constant 0 : index
    %c0_4 = arith.constant 0 : index
    %4 = vector.load %arg4[%c0_3, %c0_4] : memref<1x256xf32, #tpu.memory_space<vmem>>, vector<1x256xf32>
    %5 = vector.broadcast %4 : vector<1x256xf32> to vector<2x256xf32>
    %6 = arith.cmpf oeq, %3, %5 : vector<2x256xf32>
    %7 = arith.extui %6 : vector<2x256xi1> to vector<2x256xi32>
    %8 = arith.sitofp %7 : vector<2x256xi32> to vector<2x256xf32>
    %c0_5 = arith.constant 0 : index
    %c0_6 = arith.constant 0 : index
    %9 = vector.load %arg5[%c0_5, %c0_6] : memref<2x256xf32, #tpu.memory_space<vmem>>, vector<2x256xf32>
    tpu.vector_store %arg5[%c0_5, %c0_6], %8 {strides = array<i32>} : memref<2x256xf32, #tpu.memory_space<vmem>>, vector<2x256xf32>,
    return
  }
  func.func @transform_0(%arg0: i32, %arg1: i32) -> (i32, i32) {
    %c0_i32 = arith.constant 0 : i32
    return %arg0, %arg1 : i32, i32
  }
  func.func @transform_1(%arg0: i32, %arg1: i32) -> (i32, i32) {
    %c0_i32 = arith.constant 0 : i32
    %c0_i32_0 = arith.constant 0 : i32
    %c0_i32_1 = arith.constant 0 : i32
    return %c0_i32, %c0_i32_0 : i32, i32
  }
  func.func @transform_2(%arg0: i32, %arg1: i32) -> (i32, i32) {
    %c0_i32 = arith.constant 0 : i32
    %c0_i32_0 = arith.constant 0 : i32
    %c0_i32_1 = arith.constant 0 : i32
    return %c0_i32, %c0_i32_0 : i32, i32
  }
  func.func @transform_3(%arg0: i32, %arg1: i32) -> (i32, i32) {
    %c0_i32 = arith.constant 0 : i32
    return %arg0, %arg1 : i32, i32
  }
}

</mosaic_0001>

<bundles_post_ra>
// kernel: tpu_custom_call.1
= control target key start
LH: loop header
LB: loop body
LE: loop exit
PB: predicated region body
PF: predicated region fallthrough
CT: control target
= control target key end

     0   :  { %8 = vsyncpa [#allocation3], 0  ;;  %s297_s0 = inlined_call_operand.hbm [shape: s32[2,8], index: 0, kind: input, shape index: {}]   ;;  %s298_s1 = inlined_call_operand.hbm [shape: bf16[8,256], index: 1, kind: input, shape index: {}]   ;;  %s299_s2 = inlined_call_operand.vmem [shape: f32[1,256], index: 2, kind: input, shape index: {}]   ;;  %s300_s3 = inlined_call_operand.hbm [shape: f32[2,256], index: 3, kind: output, shape index: {}]  }
   0x1   :  { %9 = vsyncpa [#allocation6], 0 }
   0x2   :  { %10 = vsyncpa [#allocation4], 0  ;;  %s233_s12 = smov [#allocation2]   ;;  %s234_s14 = smov [#allocation5]  }
   0x3   :  { %s17_s13 = sshll.u32 %s233_s12, 4  ;;  %s27_s15 = sshll.u32 %s234_s14, 4  ;;  %s18_s13 = int_to_ptr.vmem [resolvable:$true] %s17_s13  ;;  %s28_s15 = int_to_ptr.vmem [resolvable:$true] %s27_s15 }
   0x4   :  { %s161_s18 = scalar_lea.hbm %s297_s0, 32 }
   0x5   :  { %p162_p0 = scmp.ne.s32.totalorder %s297_s0, %s161_s18  ;;  %p165_p1 = scmp.lt.u32.totalorder %s161_s18, %s297_s0 }
   0x7   :  { %p167_p2 = pnand %p165_p1, %p162_p0 }
   0x9   :  { %170 = shalt.err (!%p167_p2)
}
   0xa   :  { %s171_s23 = scalar_lea.vmem %s18_s13, 32  ;;  %p176_p4 = scmp.lt.s32.totalorder %s18_s13, %s18_s13 }
   0xb   :  { %p172_p3 = scmp.ne.s32.totalorder %s18_s13, %s171_s23  ;;  %p177_p5 = scmp.lt.s32.totalorder %s171_s23, %s171_s23 }
   0xd   :  { %p178_p6 = por %p177_p5, %p176_p4 }
   0xf   :  { %p179_p7 = pnand %p178_p6, %p172_p3 }
  0x11   :  { %182 = shalt.err (!%p179_p7)
}
  0x12   :  { %20 = dma.hbm_to_vmem [thread:$0]  %s297_s0, 32, %s18_s13, [#allocation3]  }
  0x13   :  { %s183_s28 = scalar_lea.hbm %s298_s1, 128 }
  0x14   :  { %p184_p8 = scmp.ne.s32.totalorder %s298_s1, %s183_s28  ;;  %p187_p9 = scmp.lt.u32.totalorder %s183_s28, %s298_s1 }
  0x16   :  { %p189_p10 = pnand %p187_p9, %p184_p8 }
  0x18   :  { %192 = shalt.err (!%p189_p10)
}
  0x19   :  { %s193_s6 = scalar_lea.vmem %s28_s15, 128  ;;  %p198_p12 = scmp.lt.s32.totalorder %s28_s15, %s28_s15 }
  0x1a   :  { %p194_p11 = scmp.ne.s32.totalorder %s28_s15, %s193_s6  ;;  %p199_p13 = scmp.lt.s32.totalorder %s193_s6, %s193_s6 }
  0x1c   :  { %p200_p0 = por %p199_p13, %p198_p12 }
  0x1e   :  { %p201_p1 = pnand %p200_p0, %p194_p11 }
  0x20   :  { %204 = shalt.err (!%p201_p1)
}
  0x21   :  { %30 = dma.hbm_to_vmem [thread:$0]  %s298_s1, 128, %s28_s15, [#allocation6]  }
  0x22   :  { %227 = dma.done.wait [#allocation3], 32  }
  0x23   :  { %228 = vsyncadd [#allocation3], 4294967264 }
  0x24   :  { %229 = dma.done.wait [#allocation6], 128  }
  0x25   :  { %230 = vsyncadd [#allocation6], 4294967168  ;;  %v235_v0 = vmov 0   ;;  %v43_v1 = vld [vmem:[#allocation5] sm:$0xff]  ;;  %vm53_vm0 = vcmask 1043456   ;;  %vm49_vm1 = vcmask 64512   ;;  %v103_v8 = vlaneseq }
  0x26   :  { %92 = vmatprep.mubr.bf16.mxu0 %v235_v0  ;;  %v40_v2 = vld [vmem:[#allocation2] sm:$0x3]  ;;  %v148_v3 = vcombine.high %v43_v1, %v43_v1  ;;  %v147_v4 = vcombine.low %v43_v1, %v43_v1  ;;  %s236_s9 = smov [#allocation7]   ;;  %v237_v17 = vmov 0.0  }
  0x27   :  { %v41_v5 = vcvt.s32.f32 %v40_v2  ;;  %v104_v9 = vshrl.u32 %v103_v8, 7  ;;  %v101_v11 = vld [vmem:[%s299_s2] sm:$0x3]  ;;  %s137_s10 = sshll.u32 %s236_s9, 4  ;;  %s138_s10 = int_to_ptr.vmem [resolvable:$true] %s137_s10 }
  0x28   :  { %149 = vmatprep.subr.msk.bf16.mxu0 %vm53_vm0, %v148_v3  ;;  %v55_v6 = vsel %vm53_vm0, %v147_v4, 0  ;;  %s205_s11 = scalar_lea.vmem %s138_s10, 64  ;;  %p210_p3 = scmp.lt.s32.totalorder %s138_s10, %s138_s10 }
  0x29   :  { %v42_v7 = vpack.c.bf16 %v41_v5, %v41_v5  ;;  %61 = vmatpush1.bf16.msra.mxu0 %v55_v6  ;;  %v105_v10 = vsub.s32 0, %v104_v9  ;;  %v109_v12 = vsub.s32 1, %v104_v9  ;;  %p206_p2 = scmp.ne.s32.totalorder %s138_s10, %s205_s11  ;;  %p211_p4 = scmp.lt.s32.totalorder %s205_s11, %s205_s11 }
  0x2b   :  { %v106_v13 = vrot.slane %v101_v11, %v105_v10  ;;  %v110_v14 = vrot.slane %v101_v11, %v109_v12  ;;  %p212_p5 = por %p211_p4, %p210_p3 }
  0x2c   :  { %150 = vmatmul.mubr.msk.bf16.vlgmr.msra.gmra.mrb[0].mxu0 %vm49_vm1, %v42_v7 }
  0x2d   :  { %p213_p6 = pnand %p212_p5, %p206_p2 }
  0xff   :  { %v94_v15 = vpop.f32.mrb[0].mxu0 }
 0x100   :  { %vm113_vm2 = vcmp.eq.f32.partialorder %v94_v15, %v106_v13  ;;  %v96_v16 = vpop.f32.mrb[1].mxu0 }
 0x101   :  { %v151_v18 = vsel %vm113_vm2, 1.0, %v237_v17  ;;  %vm114_vm3 = vcmp.eq.f32.partialorder %v96_v16, %v110_v14  ;;  %v98_v19 = vpop.f32.mrb[2].mxu0 }
 0x102   :  { %v152_v20 = vsel %vm114_vm3, 1.0, %v237_v17  ;;  %v99_v21 = vpop.f32.mrb[3].mxu0 }
 0x103   :  { %v121_v22 = vcombine.low %v151_v18, %v152_v20 }
 0x105   :  { %153 = vst.sshfl [vmem:[#allocation7] sm:$0x33 pattern:$0x76325410] %v121_v22 }
 0x106   :  { %216 = shalt.err (!%p213_p6)
}
 0x107   :  { %s217_s13 = scalar_lea.hbm %s300_s3, 64 }
 0x108   :  { %p218_p7 = scmp.ne.s32.totalorder %s300_s3, %s217_s13  ;;  %p221_p8 = scmp.lt.u32.totalorder %s217_s13, %s300_s3 }
 0x10a   :  { %p223_p9 = pnand %p221_p8, %p218_p7 }
 0x10c   :  { %226 = shalt.err (!%p223_p9)
}
 0x10d   :  { %140 = dma.vmem_to_hbm [thread:$0]  %s138_s10, 64, %s300_s3, [#allocation4]  }
 0x10e   :  { %231 = dma.done.wait [#allocation4], 64  }
 0x10f   :  { %232 = vsyncadd [#allocation4], 4294967232 }
 0x110   :  { %144 = vsyncpa [#allocation3], 1 }
 0x111   :  { %145 = vsyncpa [#allocation6], 1 }
 0x112   :  { %146 = vsyncpa [#allocation4], 1 }

</bundles_post_ra>
